<compile_context>
chip_gen: v5e
topology: v5e:2x2
jax: 0.10.0
libtpu: 0.0.40
codegen_flags: <defaults>
</compile_context>

<pallas_src>
import functools

import jax
import jax.numpy as jnp
import numpy as np
from jax import lax
from jax.experimental import pallas as pl
from jax.experimental.pallas import tpu as pltpu


def _round_up(x, m):
    return ((x + m - 1) // m) * m


def _rmsnorm_kernel(x_ref, w_ref, o_ref, *, eps, cast_normed):
    # x_ref: (block_rows, H), w_ref: (1, H)
    x = x_ref[...].astype(jnp.float32)
    var = jnp.mean(x * x, axis=-1, keepdims=True)
    normed = x * lax.rsqrt(var + eps)
    w = w_ref[...]
    if cast_normed:  # torch casts normed to weight dtype only when weight is half
        normed = normed.astype(w.dtype)
    o_ref[...] = (w * normed).astype(o_ref.dtype)


def _rmsnorm_residual_kernel(x_ref, r_ref, w_ref, o_ref, res_ref, *, eps, cast_normed):
    # Match torch's in-place `hidden_states += residual`: the sum is rounded to
    # the input dtype first, and that rounded value is normalized & returned.
    s = (x_ref[...].astype(jnp.float32) + r_ref[...].astype(jnp.float32)).astype(
        res_ref.dtype
    )
    res_ref[...] = s
    x = s.astype(jnp.float32)
    var = jnp.mean(x * x, axis=-1, keepdims=True)
    normed = x * lax.rsqrt(var + eps)
    w = w_ref[...]
    if cast_normed:
        normed = normed.astype(w.dtype)
    o_ref[...] = (w * normed).astype(o_ref.dtype)


def _tpu_vmem_info():
    """Returns (tile_budget_bytes, physical_vmem_bytes) for the local TPU."""
    physical = None
    try:
        physical = int(pltpu.get_tpu_info().vmem_capacity_bytes)
    except Exception:
        physical = None
    kind = ""
    try:
        kind = jax.devices()[0].device_kind.lower()
    except Exception:
        pass
    if physical is None:
        physical = 64 << 20  # conservative floor (v7x)
    if ("v5 lite" in kind) or ("v5e" in kind) or ("v5lite" in kind):
        budget = 10 << 20   # v5e: 16 MiB default scoped VMEM; stay well under it
    elif "v6" in kind:
        budget = 24 << 20   # v6e: 32 MiB default scoped / 128 MiB physical
    elif "v7" in kind:
        budget = 22 << 20   # v7x: 64 MiB physical; leave headroom
    else:
        budget = 12 << 20
    budget = min(budget, physical // 2)
    return budget, physical


def mistral_rmsnorm(
    hidden_states,
    weight,
    residual=None,
    eps=1e-6,
    block_rows=None,
    vmem_limit_bytes=None,
    out_dtype=None,
    alias_residual=True,
):
    """Pallas implementation of MistralRMSNorm.forward.

    hidden_states: [T, H], weight: [H], residual: optional [T, H].
    Returns (normed [T, H], residual [T, H] in the input dtype).
    Note: with alias_residual=True (default) and residual is not None, the
    hidden_states buffer is donated (aliased to the `res` output), matching the
    module's in-place `hidden_states += residual`.
    """
    T, H = hidden_states.shape
    in_dtype = jnp.dtype(hidden_states.dtype)
    w_is_half = jnp.dtype(weight.dtype) in (jnp.dtype(jnp.float16), jnp.dtype(jnp.bfloat16))
    # torch: normed (fp32) is cast to weight.dtype only if weight is half; the
    # product is therefore weight-dtype when weight is half, else fp32.  Callers
    # can override (e.g. bf16 outputs with fp32 weights) to cut write traffic.
    if out_dtype is None:
        out_dtype = jnp.dtype(weight.dtype) if w_is_half else jnp.dtype(jnp.float32)
    else:
        out_dtype = jnp.dtype(out_dtype)

    # --- tile sizing: RMSNorm is pure HBM-bandwidth bound. Account for BOTH the
    # double-buffered DMA streams and the in-kernel fp32 temporaries (the whole
    # tile is upcast to fp32 for the reduction and the scale).
    if residual is None:
        dma_row_bytes = H * (in_dtype.itemsize + out_dtype.itemsize)          # x in + out
        temp_row_bytes = 2 * H * 4                                            # fp32 x, normed
    else:
        res_itemsize = jnp.dtype(residual.dtype).itemsize
        dma_row_bytes = H * (
            in_dtype.itemsize + res_itemsize + out_dtype.itemsize + in_dtype.itemsize
        )                                                                     # x, r, out, res
        temp_row_bytes = 3 * H * 4                                            # fp32 x, r, normed
    per_row_bytes = 2 * dma_row_bytes + temp_row_bytes                        # 2x = double buffer

    # sublane packing of the input dtype (8 for 4-byte, 16 for bf16/fp16, 32 for 1-byte)
    packing = max(8, 32 // max(1, in_dtype.itemsize))

    budget, physical = _tpu_vmem_info()
    if block_rows is None:
        block_rows = int(max(packing, min(1024, (budget // per_row_bytes) // packing * packing)))
    if block_rows >= T:
        # Keep >=2 grid steps when possible so "parallel" can use both v7x TCs.
        half = _round_up(pl.cdiv(T, 2), packing)
        block_rows = half if half < T else T
    grid = (pl.cdiv(T, block_rows),)  # ragged last block is masked by Pallas

    # Explicit scoped-VMEM limit: our footprint + margin, clamped to physical VMEM.
    needed = block_rows * per_row_bytes + (4 << 20)
    cap = max(8 << 20, physical - (2 << 20))
    if vmem_limit_bytes is None:
        vmem_limit_bytes = min(max(needed, 16 << 20), cap)
    else:
        vmem_limit_bytes = min(int(vmem_limit_bytes), cap)

    row_spec = pl.BlockSpec((block_rows, H), lambda i: (i, 0))
    w_spec = pl.BlockSpec((1, H), lambda i: (0, 0))

    cparams = pltpu.CompilerParams(
        dimension_semantics=("parallel",),
        vmem_limit_bytes=int(vmem_limit_bytes),
    )

    w2d = weight.reshape(1, H)

    if residual is None:
        kernel = functools.partial(_rmsnorm_kernel, eps=eps, cast_normed=w_is_half)
        out = pl.pallas_call(
            kernel,
            out_shape=jax.ShapeDtypeStruct((T, H), out_dtype),
            grid_spec=pltpu.PrefetchScalarGridSpec(
                num_scalar_prefetch=0,
                grid=grid,
                in_specs=[row_spec, w_spec],
                out_specs=row_spec,
            ),
            compiler_params=cparams,
        )(hidden_states, w2d)
        # The module returns the (unmodified) input as `res`; returning the input
        # array directly avoids a full [T, H] HBM writeback.
        return out, hidden_states
    else:
        kernel = functools.partial(
            _rmsnorm_residual_kernel, eps=eps, cast_normed=w_is_half
        )
        aliases = {0: 1} if alias_residual else {}  # hidden_states -> res output
        out, res = pl.pallas_call(
            kernel,
            out_shape=(
                jax.ShapeDtypeStruct((T, H), out_dtype),
                jax.ShapeDtypeStruct((T, H), in_dtype),
            ),
            grid_spec=pltpu.PrefetchScalarGridSpec(
                num_scalar_prefetch=0,
                grid=grid,
                in_specs=[row_spec, row_spec, w_spec],
                out_specs=(row_spec, row_spec),
            ),
            compiler_params=cparams,
            input_output_aliases=aliases,
        )(hidden_states, residual, w2d)
        return out, res


def _ref_rmsnorm(hidden_states, weight, residual=None, eps=1e-6):
    if residual is not None:
        hidden_states = (hidden_states + residual).astype(hidden_states.dtype)
    res = hidden_states
    x = hidden_states.astype(jnp.float32)
    var = jnp.mean(x * x, axis=-1, keepdims=True)
    x = x * lax.rsqrt(var + eps)
    if jnp.dtype(weight.dtype) in (jnp.dtype(jnp.float16), jnp.dtype(jnp.bfloat16)):
        x = x.astype(weight.dtype)
    return weight * x, res


if __name__ == "__main__":
    key = jax.random.PRNGKey(0)
    k1, k2, k3, k4, k5 = jax.random.split(key, 5)

    T, H = 16, 256  # small shapes: 16 tokens, hidden size 256
    x_a = jax.random.normal(k1, (T, H), dtype=jnp.float32).astype(jnp.bfloat16)
    x_b = jax.random.normal(k2, (T, H), dtype=jnp.float32).astype(jnp.bfloat16)
    res_in = jax.random.normal(k3, (T, H), dtype=jnp.float32).astype(jnp.bfloat16)
    # deterministic weight init (module's __init__ just loads a [H] tensor)
    weight = (1.0 + 0.01 * jax.random.normal(k4, (H,), dtype=jnp.float32)).astype(
        jnp.bfloat16
    )
    T3 = 20
    x3 = jax.random.normal(k5, (T3, H), dtype=jnp.float32).astype(jnp.bfloat16)

    # references first (case-2 aliases/donates x_b, so compute before the kernel call)
    ref_out1, ref_r1 = _ref_rmsnorm(x_a, weight, None, 1e-6)
    ref_out2, ref_r2 = _ref_rmsnorm(x_b, weight, res_in, 1e-6)
    ref_out3, ref_r3 = _ref_rmsnorm(x3, weight, None, 1e-6)
    jax.block_until_ready((ref_out1, ref_out2, ref_out3))

    # case 1: no residual (auto block_rows / auto vmem limit)
    out1, r1 = mistral_rmsnorm(x_a, weight, residual=None, eps=1e-6)
    # case 2: with residual (hidden_states aliased to the res output)
    out2, r2 = mistral_rmsnorm(x_b, weight, residual=res_in, eps=1e-6)
    # case 3: ragged token count (T not divisible by block_rows -> masked last block)
    out3, r3 = mistral_rmsnorm(x3, weight, residual=None, eps=1e-6, block_rows=8)

    jax.block_until_ready((out1, r1, out2, r2, out3, r3))

    np.testing.assert_allclose(
        np.asarray(out1, np.float32), np.asarray(ref_out1, np.float32), atol=2e-2, rtol=2e-2
    )
    np.testing.assert_allclose(
        np.asarray(r1, np.float32), np.asarray(ref_r1, np.float32), atol=0, rtol=0
    )
    np.testing.assert_allclose(
        np.asarray(out2, np.float32), np.asarray(ref_out2, np.float32), atol=2e-2, rtol=2e-2
    )
    np.testing.assert_allclose(
        np.asarray(r2, np.float32), np.asarray(ref_r2, np.float32), atol=2e-2, rtol=2e-2
    )
    np.testing.assert_allclose(
        np.asarray(out3, np.float32), np.asarray(ref_out3, np.float32), atol=2e-2, rtol=2e-2
    )
    np.testing.assert_allclose(
        np.asarray(r3, np.float32), np.asarray(ref_r3, np.float32), atol=0, rtol=0
    )

    print("KERNEL_OK")
</pallas_src>

<mosaic_0001>
module attributes {stable_mosaic.version = 11 : i64} {
  func.func @_rmsnorm_kernel(%arg0: i32, %arg1: memref<16x256xbf16, #tpu.memory_space<vmem>>, %arg2: memref<1x256xbf16, #tpu.memory_space<vmem>>, %arg3: memref<16x256xbf16, #tpu.memory_space<vmem>>) attributes {dimension_semantics = [#tpu.dimension_semantics<parallel>], iteration_bounds = array<i64: 1>, scalar_prefetch = 0 : i64, scratch_operands = 0 : i64, tpu.core_type = #tpu.core_type<tc>, window_params = [{transform_indices = @transform_0, window_bounds = array<i64: 16, 256>}, {pipeline_mode = #tpu.pipeline_mode<synchronous>, transform_indices = @transform_1, window_bounds = array<i64: 1, 256>}, {transform_indices = @transform_2, window_bounds = array<i64: 16, 256>}]} {
    %c0 = arith.constant 0 : index
    %c0_0 = arith.constant 0 : index
    %0 = vector.load %arg1[%c0, %c0_0] : memref<16x256xbf16, #tpu.memory_space<vmem>>, vector<16x256xbf16>
    %1 = arith.extf %0 : vector<16x256xbf16> to vector<16x256xf32>
    %2 = arith.mulf %1, %1 : vector<16x256xf32>
    %cst = arith.constant dense<0.000000e+00> : vector<16xf32>
    %3 = vector.multi_reduction <add>, %2, %cst [1] : vector<16x256xf32> to vector<16xf32>
    %4 = vector.shape_cast %3 : vector<16xf32> to vector<16x1xf32>
    %cst_1 = arith.constant 2.560000e+02 : f32
    %5 = vector.broadcast %cst_1 : f32 to vector<16x1xf32>
    %6 = arith.divf %4, %5 : vector<16x1xf32>
    %cst_2 = arith.constant 9.99999997E-7 : f32
    %7 = vector.broadcast %cst_2 : f32 to vector<16x1xf32>
    %8 = arith.addf %6, %7 : vector<16x1xf32>
    %9 = math.rsqrt %8 : vector<16x1xf32>
    %10 = vector.broadcast %9 : vector<16x1xf32> to vector<16x256xf32>
    %11 = arith.mulf %1, %10 : vector<16x256xf32>
    %c0_3 = arith.constant 0 : index
    %c0_4 = arith.constant 0 : index
    %12 = vector.load %arg2[%c0_3, %c0_4] : memref<1x256xbf16, #tpu.memory_space<vmem>>, vector<1x256xbf16>
    %13 = arith.truncf %11 : vector<16x256xf32> to vector<16x256xbf16>
    %14 = vector.broadcast %12 : vector<1x256xbf16> to vector<16x256xbf16>
    %15 = arith.mulf %14, %13 : vector<16x256xbf16>
    %c0_5 = arith.constant 0 : index
    %c0_6 = arith.constant 0 : index
    %16 = vector.load %arg3[%c0_5, %c0_6] : memref<16x256xbf16, #tpu.memory_space<vmem>>, vector<16x256xbf16>
    tpu.vector_store %arg3[%c0_5, %c0_6], %15 {strides = array<i32>} : memref<16x256xbf16, #tpu.memory_space<vmem>>, vector<16x256xbf16>,
    return
  }
  func.func @transform_0(%arg0: i32) -> (i32, i32) {
    %c0_i32 = arith.constant 0 : i32
    %c0_i32_0 = arith.constant 0 : i32
    return %arg0, %c0_i32 : i32, i32
  }
  func.func @transform_1(%arg0: i32) -> (i32, i32) {
    %c0_i32 = arith.constant 0 : i32
    %c0_i32_0 = arith.constant 0 : i32
    %c0_i32_1 = arith.constant 0 : i32
    return %c0_i32, %c0_i32_0 : i32, i32
  }
  func.func @transform_2(%arg0: i32) -> (i32, i32) {
    %c0_i32 = arith.constant 0 : i32
    %c0_i32_0 = arith.constant 0 : i32
    return %arg0, %c0_i32 : i32, i32
  }
}

</mosaic_0001>

<bundles_post_ra>
// kernel: tpu_custom_call.1
= control target key start
LH: loop header
LB: loop body
LE: loop exit
PB: predicated region body
PF: predicated region fallthrough
CT: control target
= control target key end

     0   :  { %7 = vsyncpa [#allocation3], 0  ;;  %s266_s0 = inlined_call_operand.hbm [shape: bf16[16,256], index: 0, kind: input, shape index: {}]   ;;  %s267_s1 = inlined_call_operand.hbm [shape: bf16[1,256], index: 1, kind: input, shape index: {}]   ;;  %s268_s2 = inlined_call_operand.hbm [shape: bf16[16,256], index: 2, kind: output, shape index: {}]  }
   0x1   :  { %8 = vsyncpa [#allocation6], 0 }
   0x2   :  { %9 = vsyncpa [#allocation4], 0  ;;  %s14_s11 = sshll.u32 %s266_s0, 4  ;;  %s230_s12 = smov [#allocation2]   ;;  %s15_s11 = int_to_ptr.hbm [resolvable:$true] %s14_s11 }
   0x3   :  { %s16_s13 = sshll.u32 %s230_s12, 4  ;;  %s28_s16 = sshll.u32 %s267_s1, 4  ;;  %s17_s13 = int_to_ptr.vmem [resolvable:$true] %s16_s13  ;;  %s29_s16 = int_to_ptr.hbm [resolvable:$true] %s28_s16 }
   0x4   :  { %s231_s17 = smov 128   ;;  %s232_s18 = smov 8  }
   0x5   :  { %22 = dma.hbm_to_vmem [thread:$0]  %s15_s11, 256, %s17_s13, [#allocation3], %s231_s17, %s231_s17, %s232_s18  }
   0x6   :  { %s233_s19 = smov [#allocation5]  }
   0x7   :  { %s30_s20 = sshll.u32 %s233_s19, 4  ;;  %s31_s20 = int_to_ptr.vmem [resolvable:$true] %s30_s20 }
   0x8   :  { %33 = dma.hbm_to_vmem [thread:$0]  %s29_s16, 32, %s31_s20, [#allocation6]  }
   0x9   :  { %224 = dma.done.wait [#allocation3], 256  }
   0xa   :  { %225 = vsyncadd [#allocation3], 4294967040 }
   0xb   :  { %226 = dma.done.wait [#allocation6], 32  }
   0xc   :  { %227 = vsyncadd [#allocation6], 4294967264  ;;  %v93_v0 = vld [vmem:[#allocation5] sm:$0x3]  ;;  %v42_v1 = vld [vmem:[#allocation2] sm:$0xff]  ;;  %v234_v13 = vmov 256.0  }
   0xd   :  { %v43_v2 = vld [vmem:[#allocation2 + $0x8] sm:$0xff]  ;;  %97 = vst [vmem:[#allocation1] ss:$9 sm:$0xff] %v93_v0  ;;  %v44_v3 = vunpack.c.l.bf16 %v42_v1  ;;  %v45_v4 = vunpack.c.h.bf16 %v42_v1  ;;  %146 = vrcp.f32 %v234_v13  ;;  %s235_s0 = smov [#allocation7]   ;;  %s126_s23 = sshll.u32 %s268_s2, 4  ;;  %s127_s23 = int_to_ptr.hbm [resolvable:$true] %s126_s23 }
   0xe   :  { %v46_v7 = vunpack.c.l.bf16 %v43_v2  ;;  %v47_v8 = vunpack.c.h.bf16 %v43_v2  ;;  %s124_s1 = sshll.u32 %s235_s0, 4  ;;  %s125_s1 = int_to_ptr.vmem [resolvable:$true] %s124_s1 }
   0xf   :  { %v48_v5 = vmul.f32 %v44_v3, %v44_v3  ;;  %v49_v6 = vmul.f32 %v45_v4, %v45_v4 }
  0x10   :  { %v50_v10 = vmul.f32 %v46_v7, %v46_v7  ;;  %v51_v11 = vmul.f32 %v47_v8, %v47_v8 }
  0x11   :  { %v52_v9 = vadd.f32 %v49_v6, %v48_v5 }
  0x12   :  { %v55_v12 = vadd.f32 %v51_v11, %v50_v10 }
  0x13   :  { %53 = vadd.xlane.f32.xlu0 %v52_v9  ;;  %v147_v14 = vpop.eup %146 }
  0x14   :  { %v59_v15 = vmul.f32 256.0, %v147_v14  ;;  %vm63_vm0 = vweird.f32 %v147_v14  ;;  %v98_v29 = vld [vmem:[#allocation1] sm:$0xff]  ;;  %v99_v30 = vld [vmem:[#allocation1 + $0x9] sm:$0xff] }
  0x15   :  { %v100_v32 = vpack.i.b16 %v98_v29, %v98_v29  ;;  %v103_v33 = vpack.i.b16 %v99_v30, %v99_v30 }
  0x16   :  { %v60_v16 = vsub.f32 1.0, %v59_v15 }
  0x17   :  { %v102_v38 = vperm.slane %v100_v32, 0  ;;  %v105_v39 = vperm.slane %v103_v33, 0 }
  0x18   :  { %v61_v17 = vmul.f32 %v147_v14, %v60_v16 }
  0x19   :  { %v106_v46 = vunpack.c.l.bf16 %v102_v38  ;;  %v107_v47 = vunpack.c.l.bf16 %v105_v39 }
  0x1a   :  { %v62_v18 = vadd.f32 %v147_v14, %v61_v17 }
  0x1b   :  { %56 = vadd.xlane.f32.xlu0 %v55_v12 }
  0x1c   :  { %v64_v19 = vsel %vm63_vm0, %v147_v14, %v62_v18 }
  0x86   :  { %v54_v20 = vpop.xlane.xlu0 %53 }
  0x87   :  { %v65_v21 = vmul.f32 %v64_v19, %v54_v20 }
  0x89   :  { %v67_v22 = vadd.f32 1e-06, %v65_v21 }
  0x8b   :  { %148 = vrsqrt.f32 %v67_v22  ;;  %vm75_vm2 = vweird.f32 %v67_v22 }
  0x8e   :  { %v57_v23 = vpop.xlane.xlu0 %56 }
  0x8f   :  { %v66_v24 = vmul.f32 %v64_v19, %v57_v23 }
  0x91   :  { %v149_v25 = vpop.eup %148  ;;  %v68_v26 = vadd.f32 1e-06, %v66_v24 }
  0x92   :  { %v70_v27 = vmul.f32 %v149_v25, %v67_v22  ;;  %vm76_vm1 = vweird.f32 %v149_v25 }
  0x93   :  { %150 = vrsqrt.f32 %v68_v26  ;;  %vm77_vm3 = vmor %vm75_vm2, %vm76_vm1  ;;  %vm85_vm5 = vweird.f32 %v68_v26 }
  0x94   :  { %v71_v28 = vmul.f32 %v149_v25, %v70_v27 }
  0x96   :  { %v72_v31 = vmul.f32 0.5, %v71_v28 }
  0x98   :  { %v73_v34 = vsub.f32 1.5, %v72_v31 }
  0x99   :  { %v151_v35 = vpop.eup %150 }
  0x9a   :  { %v74_v36 = vmul.f32 %v149_v25, %v73_v34  ;;  %v80_v37 = vmul.f32 %v151_v35, %v68_v26  ;;  %vm86_vm4 = vweird.f32 %v151_v35 }
  0x9b   :  { %vm87_vm6 = vmor %vm85_vm5, %vm86_vm4 }
  0x9c   :  { %v78_v40 = vsel %vm77_vm3, %v149_v25, %v74_v36  ;;  %v81_v41 = vmul.f32 %v151_v35, %v80_v37 }
  0x9d   :  { %v89_v42 = vmul.f32 %v78_v40, %v44_v3  ;;  %v90_v43 = vmul.f32 %v78_v40, %v45_v4 }
  0x9e   :  { %v82_v44 = vmul.f32 0.5, %v81_v41 }
  0x9f   :  { %v94_v45 = vpack.c.bf16 %v90_v43, %v89_v42 }
  0xa0   :  { %v83_v48 = vsub.f32 1.5, %v82_v44 }
  0xa1   :  { %v108_v49 = vunpack.c.l.bf16 %v94_v45  ;;  %v109_v50 = vunpack.c.h.bf16 %v94_v45 }
  0xa2   :  { %v84_v51 = vmul.f32 %v151_v35, %v83_v48 }
  0xa3   :  { %v112_v52 = vmul.f32 %v108_v49, %v106_v46  ;;  %v113_v53 = vmul.f32 %v109_v50, %v107_v47 }
  0xa4   :  { %v88_v54 = vsel %vm87_vm6, %v151_v35, %v84_v51 }
  0xa5   :  { %v91_v55 = vmul.f32 %v88_v54, %v46_v7  ;;  %v92_v56 = vmul.f32 %v88_v54, %v47_v8  ;;  %v116_v57 = vpack.c.bf16 %v113_v53, %v112_v52 }
  0xa7   :  { %v95_v58 = vpack.c.bf16 %v92_v56, %v91_v55  ;;  %118 = vst [vmem:[#allocation7] sm:$0xff] %v116_v57 }
  0xa9   :  { %v110_v59 = vunpack.c.l.bf16 %v95_v58  ;;  %v111_v60 = vunpack.c.h.bf16 %v95_v58 }
  0xab   :  { %v114_v61 = vmul.f32 %v110_v59, %v106_v46  ;;  %v115_v62 = vmul.f32 %v111_v60, %v107_v47 }
  0xad   :  { %v117_v63 = vpack.c.bf16 %v115_v62, %v114_v61 }
  0xaf   :  { %119 = vst [vmem:[#allocation7 + $0x8] sm:$0xff] %v117_v63 }
  0xb0   :  { %132 = dma.vmem_to_hbm [thread:$0]  %s125_s1, 256, %s127_s23, [#allocation4], %s231_s17, %s231_s17, %s232_s18  }
  0xb1   :  { %228 = dma.done.wait [#allocation4], 256  }
  0xb2   :  { %229 = vsyncadd [#allocation4], 4294967040 }
  0xb3   :  { %137 = vsyncpa [#allocation3], 1 }
  0xb4   :  { %138 = vsyncpa [#allocation6], 1 }
  0xb5   :  { %139 = vsyncpa [#allocation4], 1 }

</bundles_post_ra>
